<compile_context>
chip_gen: v7x
topology: tpu7x:2x2x1
jax: 0.10.0
libtpu: 0.0.40
codegen_flags: <defaults>
</compile_context>

<pallas_src>
import math

import jax
import jax.numpy as jnp
from jax.experimental import pallas as pl
from jax.experimental.pallas import tpu as pltpu


def _round_up(x, m):
    return ((x + m - 1) // m) * m


def _choose_tile(n, requested):
    """Largest {128,256,512} tile <= requested whose padding waste is <= ~25%."""
    requested = max(128, (requested // 128) * 128)
    n128 = _round_up(n, 128)
    best = 128
    for cand in (256, 512):
        if cand <= requested and cand <= n128 and _round_up(n, cand) <= n128 + n128 // 4:
            best = cand
    return best


def gcn_kernel(adj_ref, x_ref, w_ref, b_ref, out_ref, acc_ref):
    """out[i, j] = sum_k (adj+0.2I)[i, k] @ (x[k] @ W[:, j]) + bias[j].

    Grid: (row tiles "parallel", f_out tiles "parallel", contraction "arbitrary").
    acc_ref is a per-output-tile f32 accumulator; bias add is fused on the
    final contraction step.
    """
    k = pl.program_id(2)

    @pl.when(k == 0)
    def _():
        acc_ref[...] = jnp.zeros_like(acc_ref)

    # Recompute the support k-slice on the MXU from the narrow x tile and the
    # VMEM-resident weight columns (cheaper than streaming fp-wide support).
    sup_k = jnp.dot(
        x_ref[...], w_ref[...], preferred_element_type=jnp.float32
    ).astype(adj_ref.dtype)

    # Aggregate: adj tile @ support k-slice, f32 accumulation.
    acc_ref[...] += jnp.dot(
        adj_ref[...], sup_k, preferred_element_type=jnp.float32
    )

    @pl.when(k == pl.num_programs(2) - 1)
    def _():
        out_ref[...] = (acc_ref[...] + b_ref[...]).astype(out_ref.dtype)


def graph_convolution(x, adj, weight, bias, *, tm=512, tk=512, fj=512,
                      operand_dtype=jnp.bfloat16):
    """GCN layer forward: adj @ (x @ W) + bias + 0.2 * (x @ W)."""
    N, f_in = x.shape
    f_out = weight.shape[1]
    assert adj.shape == (N, N)
    out_dtype = x.dtype

    # --- tile / padding selection -------------------------------------------
    tm = _choose_tile(N, tm)
    tk = _choose_tile(N, tk)
    npad = _round_up(N, max(tm, tk))
    # v7x shards the 'parallel' row axis across its 2 TensorCores; prefer >= 2
    # row tiles when there is enough work (no-op for small graphs / 1-TC chips).
    if npad // tm == 1 and tm >= 256:
        tm //= 2

    # Lane-dense output: pad f_out up to a multiple of 128, tile it at <= fj so
    # the per-step VMEM footprint also fits v7x's smaller VMEM.
    fp = _round_up(f_out, 128)
    fj = max(t for t in (128, 256, 512) if t <= max(fj, 128) and fp % t == 0)

    # --- operand preparation --------------------------------------------------
    # Fold the 0.2*support residual into the contraction:
    #   adj @ support + 0.2*support == (adj + 0.2*I) @ support   (O(N) update).
    diag = jnp.arange(N)
    adj_r = adj.at[diag, diag].add(jnp.asarray(0.2, adj.dtype))

    # Zero padding contributes exact zeros to the contraction; bf16 operands,
    # f32 accumulation (bias kept in f32, added in the epilogue).
    adj_p = jnp.pad(adj_r, ((0, npad - N), (0, npad - N))).astype(operand_dtype)
    x_p = jnp.pad(x, ((0, npad - N), (0, 0))).astype(operand_dtype)
    w_p = jnp.pad(weight, ((0, 0), (0, fp - f_out))).astype(operand_dtype)
    b_p = jnp.pad(bias, (0, fp - f_out)).reshape(1, fp).astype(jnp.float32)

    grid = (npad // tm, fp // fj, npad // tk)

    out_p = pl.pallas_call(
        gcn_kernel,
        out_shape=jax.ShapeDtypeStruct((npad, fp), out_dtype),
        grid_spec=pltpu.PrefetchScalarGridSpec(
            num_scalar_prefetch=0,
            grid=grid,
            in_specs=[
                pl.BlockSpec((tm, tk), lambda i, j, k: (i, k)),    # adj tile
                pl.BlockSpec((tk, f_in), lambda i, j, k: (k, 0)),  # x k-tile (narrow)
                pl.BlockSpec((f_in, fj), lambda i, j, k: (0, j)),  # weight cols (resident)
                pl.BlockSpec((1, fj), lambda i, j, k: (0, j)),     # bias row
            ],
            out_specs=pl.BlockSpec((tm, fj), lambda i, j, k: (i, j)),
            scratch_shapes=[pltpu.VMEM((tm, fj), jnp.float32)],    # f32 accumulator
        ),
        compiler_params=pltpu.CompilerParams(
            # Row and output-column tiles are independent (shard across v7x's
            # 2 TensorCores); the contraction axis carries the accumulator.
            dimension_semantics=("parallel", "parallel", "arbitrary"),
        ),
    )(adj_p, x_p, w_p, b_p)

    return out_p[:N, :f_out]


if __name__ == "__main__":
    # Small, TPU-friendly shapes consistent with the module.
    N, F_IN, F_OUT = 128, 32, 64

    key = jax.random.PRNGKey(0)
    k_x, k_adj, k_w, k_b = jax.random.split(key, 4)

    # Deterministic parameter init mirroring reset_parameters():
    # uniform(-stdv, stdv) with stdv = 1/sqrt(out_features).
    stdv = 1.0 / math.sqrt(F_OUT)
    weight = jax.random.uniform(
        k_w, (F_IN, F_OUT), jnp.float32, minval=-stdv, maxval=stdv
    )
    bias = jax.random.uniform(k_b, (F_OUT,), jnp.float32, minval=-stdv, maxval=stdv)

    # Inputs: node features and a (normalized-ish) dense adjacency.
    x = jax.random.normal(k_x, (N, F_IN), jnp.float32)
    adj = jax.random.uniform(k_adj, (N, N), jnp.float32) / N

    out = jax.block_until_ready(graph_convolution(x, adj, weight, bias))

    # Pure-JAX f32 reference check (kernel uses bf16 operands + f32 accumulation,
    # so the tolerance is set for bf16 operand rounding).
    support_ref = x @ weight
    ref = adj @ support_ref + bias + 0.2 * support_ref
    assert out.shape == (N, F_OUT)
    assert jnp.allclose(out, ref, atol=2e-2, rtol=2e-2), (
        float(jnp.max(jnp.abs(out - ref)))
    )

    print("KERNEL_OK")
</pallas_src>

<mosaic_0001>
module attributes {stable_mosaic.version = 11 : i64} {
  func.func @gcn_kernel(%arg0: i32, %arg1: i32, %arg2: i32, %arg3: memref<128x128xbf16, #tpu.memory_space<vmem>>, %arg4: memref<128x32xbf16, #tpu.memory_space<vmem>>, %arg5: memref<32x128xbf16, #tpu.memory_space<vmem>>, %arg6: memref<1x128xf32, #tpu.memory_space<vmem>>, %arg7: memref<128x128xf32, #tpu.memory_space<vmem>>, %arg8: memref<128x128xf32, #tpu.memory_space<vmem>>) attributes {dimension_semantics = [#tpu.dimension_semantics<parallel>, #tpu.dimension_semantics<parallel>, #tpu.dimension_semantics<arbitrary>], iteration_bounds = array<i64: 1, 1, 1>, scalar_prefetch = 0 : i64, scratch_operands = 1 : i64, tpu.core_type = #tpu.core_type<tc>, window_params = [{transform_indices = @transform_0, window_bounds = array<i64: 128, 128>}, {transform_indices = @transform_1, window_bounds = array<i64: 128, 32>}, {transform_indices = @transform_2, window_bounds = array<i64: 32, 128>}, {transform_indices = @transform_3, window_bounds = array<i64: 1, 128>}, {transform_indices = @transform_4, window_bounds = array<i64: 128, 128>}]} {
    %c0_i32 = arith.constant 0 : i32
    %0 = arith.cmpi eq, %arg2, %c0_i32 : i32
    %1 = arith.extui %0 : i1 to i32
    %c0_i32_0 = arith.constant 0 : i32
    %2 = arith.cmpi ne, %1, %c0_i32_0 : i32
    scf.if %2 {
      %cst_13 = arith.constant 0.000000e+00 : f32
      %15 = vector.broadcast %cst_13 : f32 to vector<128x128xf32>
      %c0_14 = arith.constant 0 : index
      %c0_15 = arith.constant 0 : index
      %16 = vector.load %arg8[%c0_14, %c0_15] : memref<128x128xf32, #tpu.memory_space<vmem>>, vector<128x128xf32>
      tpu.vector_store %arg8[%c0_14, %c0_15], %15 {strides = array<i32>} : memref<128x128xf32, #tpu.memory_space<vmem>>, vector<128x128xf32>,
    } else {
    }
    %c0 = arith.constant 0 : index
    %c0_1 = arith.constant 0 : index
    %3 = vector.load %arg4[%c0, %c0_1] : memref<128x32xbf16, #tpu.memory_space<vmem>>, vector<128x32xbf16>
    %c0_2 = arith.constant 0 : index
    %c0_3 = arith.constant 0 : index
    %4 = vector.load %arg5[%c0_2, %c0_3] : memref<32x128xbf16, #tpu.memory_space<vmem>>, vector<32x128xbf16>
    %cst = arith.constant dense<0.000000e+00> : vector<128x128xf32>
    %5 = tpu.matmul %3, %4, %cst {dimension_numbers = #tpu.dot_dimension_numbers<[1], [0], [0], [1], [0, 0, 1, 1], [], []>} : vector<128x32xbf16>, vector<32x128xbf16>, vector<128x128xf32> -> vector<128x128xf32>
    %6 = arith.truncf %5 : vector<128x128xf32> to vector<128x128xbf16>
    %c0_4 = arith.constant 0 : index
    %c0_5 = arith.constant 0 : index
    %7 = vector.load %arg8[%c0_4, %c0_5] : memref<128x128xf32, #tpu.memory_space<vmem>>, vector<128x128xf32>
    %c0_6 = arith.constant 0 : index
    %c0_7 = arith.constant 0 : index
    %8 = vector.load %arg3[%c0_6, %c0_7] : memref<128x128xbf16, #tpu.memory_space<vmem>>, vector<128x128xbf16>
    %cst_8 = arith.constant dense<0.000000e+00> : vector<128x128xf32>
    %9 = tpu.matmul %8, %6, %cst_8 {dimension_numbers = #tpu.dot_dimension_numbers<[1], [0], [0], [1], [0, 0, 1, 1], [], []>} : vector<128x128xbf16>, vector<128x128xbf16>, vector<128x128xf32> -> vector<128x128xf32>
    %10 = arith.addf %7, %9 : vector<128x128xf32>
    %c0_9 = arith.constant 0 : index
    %c0_10 = arith.constant 0 : index
    %11 = vector.load %arg8[%c0_9, %c0_10] : memref<128x128xf32, #tpu.memory_space<vmem>>, vector<128x128xf32>
    tpu.vector_store %arg8[%c0_9, %c0_10], %10 {strides = array<i32>} : memref<128x128xf32, #tpu.memory_space<vmem>>, vector<128x128xf32>,
    %c0_i32_11 = arith.constant 0 : i32
    %12 = arith.cmpi eq, %arg2, %c0_i32_11 : i32
    %13 = arith.extui %12 : i1 to i32
    %c0_i32_12 = arith.constant 0 : i32
    %14 = arith.cmpi ne, %13, %c0_i32_12 : i32
    scf.if %14 {
      %c0_13 = arith.constant 0 : index
      %c0_14 = arith.constant 0 : index
      %15 = vector.load %arg8[%c0_13, %c0_14] : memref<128x128xf32, #tpu.memory_space<vmem>>, vector<128x128xf32>
      %c0_15 = arith.constant 0 : index
      %c0_16 = arith.constant 0 : index
      %16 = vector.load %arg6[%c0_15, %c0_16] : memref<1x128xf32, #tpu.memory_space<vmem>>, vector<1x128xf32>
      %17 = vector.broadcast %16 : vector<1x128xf32> to vector<128x128xf32>
      %18 = arith.addf %15, %17 : vector<128x128xf32>
      %c0_17 = arith.constant 0 : index
      %c0_18 = arith.constant 0 : index
      %19 = vector.load %arg7[%c0_17, %c0_18] : memref<128x128xf32, #tpu.memory_space<vmem>>, vector<128x128xf32>
      tpu.vector_store %arg7[%c0_17, %c0_18], %18 {strides = array<i32>} : memref<128x128xf32, #tpu.memory_space<vmem>>, vector<128x128xf32>,
    } else {
    }
    return
  }
  func.func @transform_0(%arg0: i32, %arg1: i32, %arg2: i32) -> (i32, i32) {
    %c0_i32 = arith.constant 0 : i32
    return %arg0, %arg2 : i32, i32
  }
  func.func @transform_1(%arg0: i32, %arg1: i32, %arg2: i32) -> (i32, i32) {
    %c0_i32 = arith.constant 0 : i32
    %c0_i32_0 = arith.constant 0 : i32
    return %arg2, %c0_i32 : i32, i32
  }
  func.func @transform_2(%arg0: i32, %arg1: i32, %arg2: i32) -> (i32, i32) {
    %c0_i32 = arith.constant 0 : i32
    %c0_i32_0 = arith.constant 0 : i32
    return %c0_i32, %arg1 : i32, i32
  }
  func.func @transform_3(%arg0: i32, %arg1: i32, %arg2: i32) -> (i32, i32) {
    %c0_i32 = arith.constant 0 : i32
    %c0_i32_0 = arith.constant 0 : i32
    return %c0_i32, %arg1 : i32, i32
  }
  func.func @transform_4(%arg0: i32, %arg1: i32, %arg2: i32) -> (i32, i32) {
    %c0_i32 = arith.constant 0 : i32
    return %arg0, %arg1 : i32, i32
  }
}

</mosaic_0001>

<bundles_post_ra>
// kernel: tpu_custom_call.1
= control target key start
LH: loop header
LB: loop body
LE: loop exit
PB: predicated region body
PF: predicated region fallthrough
CT: control target
= control target key end

     0   :  { %vm111_vm0 = vcmask 261120   ;;  %s795_s0 = inlined_call_operand.vmem [shape: bf16[128,128], index: 0, kind: input, shape index: {}]   ;;  %s796_s1 = inlined_call_operand.vmem [shape: bf16[128,32], index: 1, kind: input, shape index: {}]   ;;  %s797_s2 = inlined_call_operand.vmem [shape: bf16[32,128], index: 2, kind: input, shape index: {}]   ;;  %s798_s3 = inlined_call_operand.vmem [shape: f32[1,128], index: 3, kind: input, shape index: {}]   ;;  %s799_s4 = inlined_call_operand.hbm [shape: f32[128,128], index: 4, kind: output, shape index: {}]  }
   0x1   :  { %v648_v0 = vld [vmem:[%s797_s2] sm:$0xff]   ;;  %v649_v1 = vld [vmem:[%s797_s2 + $0x8] sm:$0xff]   ;;  %v652_v4 = vld [vmem:[%s796_s1 + $0x10] sm:$0xff]  }
   0x2   :  { %577 = vmatprep.subr.bf16.mxu0 %v648_v0  ;;  %v650_v2 = vld [vmem:[%s796_s1] sm:$0xff]   ;;  %v651_v3 = vld [vmem:[%s796_s1 + $0x8] sm:$0xff]   ;;  %v653_v5 = vld [vmem:[%s796_s1 + $0x18] sm:$0xff]  }
   0x3   :  { %578 = vmatpush3.bf16.msra.mxu0 %v648_v0  ;;  %581 = vmatprep.mubr.msk.bf16.mxu0 %vm111_vm0, %v650_v2  ;;  %v654_v6 = vld [vmem:[%s796_s1 + $0x20] sm:$0xff]  }
   0x4   :  { %579 = vmatprep.subr.bf16.mxu0 %v649_v1 }
   0x7   :  { %580 = vmatpush3.bf16.msra.mxu0 %v649_v1 }
   0xa   :  { %582 = vmatmul.mubr.msk.bf16.vlgmr.msra.gmra.mrb[0].mxu0 %vm111_vm0, %v651_v3 }
   0xb   :  { %585 = vmatprep.mubr.msk.bf16.mxu0 %vm111_vm0, %v652_v4 }
   0xc   :  { %9 = vsyncpa [#allocation4], 0  ;;  %v655_v7 = vld [vmem:[%s796_s1 + $0x28] sm:$0xff]   ;;  %v656_v8 = vld [vmem:[%s796_s1 + $0x30] sm:$0xff]  }
   0xd   :  { %v657_v9 = vld [vmem:[%s796_s1 + $0x38] sm:$0xff]   ;;  %v658_v10 = vld [vmem:[%s795_s0 + $0x10] sm:$0xff]   ;;  %v662_v11 = vld [vmem:[%s795_s0] sm:$0xff]  }
   0xe   :  { %617 = vmatprep.mubr.bf16.mxu1 %v658_v10  ;;  %v659_v36 = vld [vmem:[%s795_s0 + $0x18] sm:$0xff]   ;;  %v663_v37 = vld [vmem:[%s795_s0 + $0x8] sm:$0xff]   ;;  %v660_v38 = vld [vmem:[%s795_s0 + $0x20] sm:$0xff]  }
   0xf   :  { %v661_v39 = vld [vmem:[%s795_s0 + $0x28] sm:$0xff]   ;;  %v664_v40 = vld [vmem:[%s795_s0 + $0x30] sm:$0xff]   ;;  %v665_v41 = vld [vmem:[%s795_s0 + $0x38] sm:$0xff]   ;;  %s690_s0 = smov [#allocation3]  }
  0x10   :  { %v550_v42 = vld [vmem:[%s798_s3] ss:$0 sm:$0xff]  ;;  %s513_s3 = sshll.u32 %s690_s0, 4  ;;  %s514_s3 = int_to_ptr.vmem [resolvable:$true] %s513_s3 }
  0x11   :  { %s666_s2 = scalar_lea.vmem %s514_s3, 2048  ;;  %p671_p1 = scmp.lt.s32.totalorder %s514_s3, %s514_s3 }
  0x12   :  { %586 = vmatmul.mubr.msk.bf16.gmra.mrb[4].mxu0 %vm111_vm0, %v653_v5  ;;  %p667_p0 = scmp.ne.s32.totalorder %s514_s3, %s666_s2  ;;  %p672_p2 = scmp.lt.s32.totalorder %s666_s2, %s666_s2 }
  0x13   :  { %589 = vmatprep.mubr.msk.bf16.mxu0 %vm111_vm0, %v654_v6 }
  0x14   :  { %p673_p3 = por %p672_p2, %p671_p1 }
  0x16   :  { %p674_p4 = pnand %p673_p3, %p667_p0 }
  0x1a   :  { %590 = vmatmul.mubr.msk.bf16.gmra.mrb[8].mxu0 %vm111_vm0, %v655_v7 }
  0x1b   :  { %593 = vmatprep.mubr.msk.bf16.mxu0 %vm111_vm0, %v656_v8 }
  0x22   :  { %594 = vmatmul.mubr.msk.bf16.gmra.mrb[12].mxu0 %vm111_vm0, %v657_v9 }
  0x23   :  { %613 = vmatprep.mubr.bf16.mxu0 %v662_v11 }
  0xdd   :  { %v583_v12 = vpop.f32.mrb[0].mxu0 }
  0xde   :  { %v170_v13 = vpop.f32.mrb[1].mxu0 }
  0xdf   :  { %v584_v14 = vpop.f32.mrb[2].mxu0 }
  0xe0   :  { %v234_v15 = vpack.c.bf16 %v584_v14, %v583_v12  ;;  %v173_v16 = vpop.f32.mrb[3].mxu0 }
  0xe1   :  { %v233_v17 = vpack.c.bf16 %v173_v16, %v170_v13 }
  0xe3   :  { %597 = vmatprep.subr.bf16.mxu0 %v233_v17  ;;  %629 = vmatprep.subr.bf16.mxu1 %v233_v17 }
  0xe4   :  { %598 = vmatpush3.bf16.msra.mxu0 %v233_v17  ;;  %637 = vmatpush3.bf16.msra.mxu1 %v233_v17 }
  0xe5   :  { %v587_v18 = vpop.f32.mrb[4].mxu0  ;;  %599 = vmatprep.subr.bf16.mxu0 %v234_v15  ;;  %630 = vmatprep.subr.bf16.mxu1 %v234_v15 }
  0xe6   :  { %v186_v19 = vpop.f32.mrb[5].mxu0 }
  0xe7   :  { %v588_v20 = vpop.f32.mrb[6].mxu0 }
  0xe8   :  { %v236_v21 = vpack.c.bf16 %v588_v20, %v587_v18  ;;  %v189_v22 = vpop.f32.mrb[7].mxu0  ;;  %600 = vmatpush3.bf16.msra.mxu0 %v234_v15  ;;  %638 = vmatpush3.bf16.msra.mxu1 %v234_v15 }
  0xe9   :  { %v235_v23 = vpack.c.bf16 %v189_v22, %v186_v19 }
  0xeb   :  { %601 = vmatprep.subr.bf16.mxu0 %v235_v23  ;;  %631 = vmatprep.subr.bf16.mxu1 %v235_v23 }
  0xec   :  { %602 = vmatpush3.bf16.msra.mxu0 %v235_v23  ;;  %639 = vmatpush3.bf16.msra.mxu1 %v235_v23 }
  0xed   :  { %v591_v24 = vpop.f32.mrb[8].mxu0  ;;  %603 = vmatprep.subr.bf16.mxu0 %v236_v21  ;;  %632 = vmatprep.subr.bf16.mxu1 %v236_v21 }
  0xee   :  { %v202_v25 = vpop.f32.mrb[9].mxu0 }
  0xef   :  { %v592_v26 = vpop.f32.mrb[10].mxu0 }
  0xf0   :  { %v238_v27 = vpack.c.bf16 %v592_v26, %v591_v24  ;;  %v205_v28 = vpop.f32.mrb[11].mxu0  ;;  %604 = vmatpush3.bf16.msra.mxu0 %v236_v21  ;;  %640 = vmatpush3.bf16.msra.mxu1 %v236_v21 }
  0xf1   :  { %v237_v29 = vpack.c.bf16 %v205_v28, %v202_v25 }
  0xf3   :  { %605 = vmatprep.subr.bf16.mxu0 %v237_v29  ;;  %633 = vmatprep.subr.bf16.mxu1 %v237_v29 }
  0xf4   :  { %606 = vmatpush3.bf16.msra.mxu0 %v237_v29  ;;  %641 = vmatpush3.bf16.msra.mxu1 %v237_v29 }
  0xf5   :  { %v595_v30 = vpop.f32.mrb[12].mxu0  ;;  %607 = vmatprep.subr.bf16.mxu0 %v238_v27  ;;  %634 = vmatprep.subr.bf16.mxu1 %v238_v27 }
  0xf6   :  { %v218_v31 = vpop.f32.mrb[13].mxu0 }
  0xf7   :  { %v596_v32 = vpop.f32.mrb[14].mxu0 }
  0xf8   :  { %v240_v33 = vpack.c.bf16 %v596_v32, %v595_v30  ;;  %v221_v34 = vpop.f32.mrb[15].mxu0  ;;  %608 = vmatpush3.bf16.msra.mxu0 %v238_v27  ;;  %642 = vmatpush3.bf16.msra.mxu1 %v238_v27 }
  0xf9   :  { %v239_v35 = vpack.c.bf16 %v221_v34, %v218_v31 }
  0xfb   :  { %609 = vmatprep.subr.bf16.mxu0 %v239_v35  ;;  %635 = vmatprep.subr.bf16.mxu1 %v239_v35 }
  0xfc   :  { %610 = vmatpush3.bf16.msra.mxu0 %v239_v35  ;;  %643 = vmatpush3.bf16.msra.mxu1 %v239_v35 }
  0xfd   :  { %611 = vmatprep.subr.bf16.mxu0 %v240_v33  ;;  %636 = vmatprep.subr.bf16.mxu1 %v240_v33 }
 0x100   :  { %612 = vmatpush3.bf16.msra.mxu0 %v240_v33  ;;  %644 = vmatpush3.bf16.msra.mxu1 %v240_v33 }
 0x103   :  { %618 = vmatmul.mubr.bf16.vlgmr.msra.gmra.mrb[0].mxu1 %v659_v36  ;;  %614 = vmatmul.mubr.bf16.vlgmr.msra.gmra.mrb[16].mxu0 %v663_v37 }
 0x104   :  { %621 = vmatprep.mubr.bf16.mxu1 %v660_v38 }
 0x10b   :  { %622 = vmatmul.mubr.bf16.gmra.mrb[4].mxu1 %v661_v39 }
 0x10c   :  { %625 = vmatprep.mubr.bf16.mxu1 %v664_v40 }
 0x113   :  { %626 = vmatmul.mubr.bf16.gmra.mrb[8].mxu1 %v665_v41 }
 0x1d6   :  { %v619_v43 = vpop.f32.mrb[0].mxu1  ;;  %v615_v44 = vpop.f32.mrb[16].mxu0 }
 0x1d7   :  { %v482_v45 = vadd.f32 %v619_v43, %v550_v42  ;;  %v371_v46 = vpop.f32.mrb[1].mxu1  ;;  %v478_v47 = vadd.f32 %v615_v44, %v550_v42  ;;  %v355_v48 = vpop.f32.mrb[17].mxu0 }
 0x1d8   :  { %v480_v49 = vadd.f32 %v550_v42, %v371_v46  ;;  %v620_v50 = vpop.f32.mrb[2].mxu1  ;;  %v476_v51 = vadd.f32 %v550_v42, %v355_v48  ;;  %v616_v52 = vpop.f32.mrb[18].mxu0 }
 0x1d9   :  { %498 = vst [vmem:[#allocation3 + $0x30] sm:$0xff] %v482_v45  ;;  %v483_v53 = vadd.f32 %v620_v50, %v550_v42  ;;  %v374_v54 = vpop.f32.mrb[3].mxu1  ;;  %494 = vst [vmem:[#allocation3 + $0x10] sm:$0xff] %v478_v47  ;;  %v479_v55 = vadd.f32 %v616_v52, %v550_v42  ;;  %v358_v56 = vpop.f32.mrb[19].mxu0 }
 0x1da   :  { %496 = vst [vmem:[#allocation3 + $0x20] sm:$0xff] %v480_v49  ;;  %v481_v57 = vadd.f32 %v550_v42, %v374_v54  ;;  %492 = vst [vmem:[#allocation3] sm:$0xff] %v476_v51  ;;  %v477_v58 = vadd.f32 %v550_v42, %v358_v56 }
 0x1db   :  { %499 = vst [vmem:[#allocation3 + $0x38] sm:$0xff] %v483_v53  ;;  %495 = vst [vmem:[#allocation3 + $0x18] sm:$0xff] %v479_v55 }
 0x1dc   :  { %497 = vst [vmem:[#allocation3 + $0x28] sm:$0xff] %v481_v57  ;;  %493 = vst [vmem:[#allocation3 + $0x8] sm:$0xff] %v477_v58 }
 0x1de   :  { %v623_v59 = vpop.f32.mrb[4].mxu1 }
 0x1df   :  { %v486_v60 = vadd.f32 %v623_v59, %v550_v42  ;;  %v387_v61 = vpop.f32.mrb[5].mxu1 }
 0x1e0   :  { %v484_v62 = vadd.f32 %v550_v42, %v387_v61  ;;  %v624_v63 = vpop.f32.mrb[6].mxu1 }
 0x1e1   :  { %502 = vst [vmem:[#allocation3 + $0x50] sm:$0xff] %v486_v60  ;;  %v487_v0 = vadd.f32 %v624_v63, %v550_v42  ;;  %v390_v1 = vpop.f32.mrb[7].mxu1 }
 0x1e2   :  { %500 = vst [vmem:[#allocation3 + $0x40] sm:$0xff] %v484_v62  ;;  %v485_v2 = vadd.f32 %v550_v42, %v390_v1 }
 0x1e3   :  { %503 = vst [vmem:[#allocation3 + $0x58] sm:$0xff] %v487_v0 }
 0x1e4   :  { %501 = vst [vmem:[#allocation3 + $0x48] sm:$0xff] %v485_v2 }
 0x1e6   :  { %v627_v3 = vpop.f32.mrb[8].mxu1 }
 0x1e7   :  { %v490_v4 = vadd.f32 %v627_v3, %v550_v42  ;;  %v403_v5 = vpop.f32.mrb[9].mxu1 }
 0x1e8   :  { %v488_v6 = vadd.f32 %v550_v42, %v403_v5  ;;  %v628_v7 = vpop.f32.mrb[10].mxu1 }
 0x1e9   :  { %506 = vst [vmem:[#allocation3 + $0x70] sm:$0xff] %v490_v4  ;;  %v491_v8 = vadd.f32 %v628_v7, %v550_v42  ;;  %v406_v9 = vpop.f32.mrb[11].mxu1 }
 0x1ea   :  { %504 = vst [vmem:[#allocation3 + $0x60] sm:$0xff] %v488_v6  ;;  %v489_v10 = vadd.f32 %v550_v42, %v406_v9 }
 0x1eb   :  { %507 = vst [vmem:[#allocation3 + $0x78] sm:$0xff] %v491_v8 }
 0x1ec   :  { %505 = vst [vmem:[#allocation3 + $0x68] sm:$0xff] %v489_v10 }
 0x1ed   :  { %677 = shalt.err (!%p674_p4)
}
 0x1ee   :  { %s678_s27 = scalar_lea.hbm %s799_s4, 2048 }
 0x1ef   :  { %p679_p5 = scmp.ne.s32.totalorder %s799_s4, %s678_s27  ;;  %p682_p6 = scmp.lt.u32.totalorder %s678_s27, %s799_s4 }
 0x1f1   :  { %p684_p7 = pnand %p682_p6, %p679_p5 }
 0x1f3   :  { %687 = shalt.err (!%p684_p7)
}
 0x1f4   :  { %s691_s6 = smov 128   ;;  %s692_s7 = smov 8  }
 0x1f5   :  { %519 = dma.vmem_to_hbm [thread:$0]  %s514_s3, 2048, %s799_s4, [#allocation4], %s691_s6, %s691_s6, %s692_s7  }
 0x1f6   :  { %688 = dma.done.wait [#allocation4], 2048  }
 0x1f7   :  { %689 = vsyncadd [#allocation4], 4294965248 }
 0x1f8   :  { %523 = vsyncpa [#allocation4], 1 }

</bundles_post_ra>
